<compile_context>
chip_gen: v6e
topology: v6e:2x2x1
jax: 0.10.0
libtpu: 0.0.40
codegen_flags: <defaults>
</compile_context>

<pallas_src>
import numpy as np
import jax
import jax.numpy as jnp
from jax import lax
from jax.experimental import pallas as pl
from jax.experimental.pallas import tpu as pltpu

NEG_SLOPE = 0.01  # PyTorch leaky_relu default
KH = KW = 3
STRIDE = 3
PAD = 4


def _round_up(v, m):
    return ((v + m - 1) // m) * m


def _fused_rowgather_leaky(idx_flat, z2, bias2, *, n, ohp, trow, kp, lblk, nlb):
    """out[b, oh, :] = leaky_relu(sum_{kh} Z[b, idx[kh, oh], :] + bias)."""

    def kernel(idx_ref, z_ref, bias_ref, o_ref):
        # idx_ref : SMEM int32 (KH*OHp,)  row-gather table (invalid taps -> zero row)
        # z_ref   : (Kp, LBLK)  weight-folded slab, VMEM-resident across row blocks
        # bias_ref: (1, LBLK)
        # o_ref   : (TROW, LBLK) lane-dense output block
        base = pl.program_id(1) * trow
        bias = bias_ref[...]

        def body(r, carry):
            oh = base + r
            i0 = idx_ref[oh]
            i1 = idx_ref[ohp + oh]
            i2 = idx_ref[2 * ohp + oh]
            acc = (z_ref[pl.ds(i0, 1), :] + z_ref[pl.ds(i1, 1), :]
                   + z_ref[pl.ds(i2, 1), :] + bias)
            o_ref[pl.ds(r, 1), :] = jnp.where(acc > 0, acc, NEG_SLOPE * acc)
            return carry

        lax.fori_loop(0, trow, body, 0)

    grid = (n, ohp // trow, nlb)
    return pl.pallas_call(
        kernel,
        out_shape=jax.ShapeDtypeStruct((n, ohp, nlb * lblk), jnp.float32),
        grid_spec=pltpu.PrefetchScalarGridSpec(
            num_scalar_prefetch=1,
            grid=grid,
            in_specs=[
                pl.BlockSpec((None, kp, lblk), lambda b, t, j, idx: (b, 0, j)),
                pl.BlockSpec((1, lblk), lambda b, t, j, idx: (0, j)),
            ],
            out_specs=pl.BlockSpec((None, trow, lblk), lambda b, t, j, idx: (b, t, j)),
        ),
        compiler_params=pltpu.CompilerParams(
            dimension_semantics=("parallel", "parallel", "parallel"),
            vmem_limit_bytes=32 * 1024 * 1024,
        ),
    )(idx_flat, z2, bias2)


def model_forward(x, weight, bias):
    """x: (N, C, H, W) f32, weight: (CO, C, 3, 3), bias: (CO,) -> (N, CO, OH, OW)."""
    N, C, H, W = x.shape
    CO = weight.shape[0]

    HU, WU = 2 * H, 2 * W                                  # nearest-2x upsampled size
    OH = (HU + 2 * PAD - KH) // STRIDE + 1
    OW = (WU + 2 * PAD - KW) // STRIDE + 1

    # pad output width so CO*OWp is a multiple of 128 (fully lane-dense, unmasked stores)
    OWp = _round_up(OW, 8)
    while (CO * OWp) % 128 != 0:
        OWp += 8
    co_owp = CO * OWp
    assert co_owp % 128 == 0, (CO, OWp)

    # lane split: for large shapes give each TensorCore its own half of the lane dim
    nlb = 2 if (co_owp >= 2048 and (co_owp // 2) % 128 == 0) else 1
    lblk = co_owp // nlb

    # one full-height row block when possible (full M-streaming, few grid steps)
    trow = min(512, _round_up(OH, 8))
    OHp = _round_up(OH, trow)

    # padded row count of the folded slab; rows >= KH*H are zero (target for invalid taps)
    Kp = _round_up(KH * H + 1, 8)
    ZERO_ROW = KH * H

    # ---- static gather tables (numpy, trace time) ----------------------------------
    # column gather: upsampled col q = STRIDE*ow + kw - PAD reads source col q//2
    ow_i = np.arange(OWp)
    kw_i = np.arange(KW)
    q = STRIDE * ow_i[None, :] + kw_i[:, None] - PAD            # (KW, OWp)
    c_valid = (q >= 0) & (q < WU) & (ow_i[None, :] < OW)
    c_src = np.clip(q // 2, 0, W - 1).astype(np.int32)          # (KW, OWp)

    # row gather: upsampled row p = STRIDE*oh + kh - PAD reads source row p//2
    idx = np.full((KH, OHp), ZERO_ROW, dtype=np.int32)
    oh_i = np.arange(OH)
    for kh in range(KH):
        p = STRIDE * oh_i + kh - PAD
        valid = (p >= 0) & (p < HU)
        src = np.clip(p // 2, 0, H - 1)
        idx[kh, :OH] = np.where(valid, kh * H + src, ZERO_ROW)
    idx_flat = jnp.asarray(idx.reshape(-1), dtype=jnp.int32)    # (KH*OHp,)

    x32 = x.astype(jnp.float32)
    w32 = weight.astype(jnp.float32)

    # ---- XLA glue: column gather + weight folding -----------------------------------
    # Xc[n,c,h,kw,ow] = x[n,c,h,c_src(kw,ow)] * c_valid(kw,ow)  (pure gather, no MXU)
    Xc = jnp.take(x32, jnp.asarray(c_src.reshape(-1)), axis=3)
    Xc = Xc.reshape(N, C, H, KW, OWp) * jnp.asarray(c_valid.astype(np.float32))[None, None, None]
    # Z[n,kh,h,co,ow] = sum_{c,kw} W[co,c,kh,kw] * Xc[n,c,h,kw,ow]
    # TODO(synk): this small weight-folding matmul (C*KW=48 contraction) stays in XLA;
    # fusing it into the Pallas kernel would need an awkward in-VMEM rank-3 relayout.
    Z = jnp.einsum('nchjo,ackj->nkhao', Xc, w32, precision=lax.Precision.HIGHEST)
    Z2 = Z.reshape(N, KH * H, co_owp)
    Z2 = jnp.pad(Z2, ((0, 0), (0, Kp - KH * H), (0, 0)))        # zero rows for invalid taps

    bias2 = jnp.broadcast_to(bias.astype(jnp.float32)[:, None],
                             (CO, OWp)).reshape(1, co_owp)

    out2 = _fused_rowgather_leaky(idx_flat, Z2, bias2,
                                  n=N, ohp=OHp, trow=trow, kp=Kp, lblk=lblk, nlb=nlb)

    out = out2.reshape(N, OHp, CO, OWp).transpose(0, 2, 1, 3)[:, :, :OH, :OW]
    return out


if __name__ == "__main__":
    key = jax.random.PRNGKey(0)
    kx, kw_, kb = jax.random.split(key, 3)

    # small-shape version of x1 = torch.randn(1, 16, 226, 226) (conv requires C=16)
    N, C, H, W = 2, 16, 16, 16
    CO = 16
    x = jax.random.normal(kx, (N, C, H, W), dtype=jnp.float32)

    # deterministic Conv2d(16, 16, 3) parameters
    fan_in = C * KH * KW
    bound = 1.0 / (fan_in ** 0.5)
    weight = jax.random.uniform(kw_, (CO, C, KH, KW), jnp.float32, -bound, bound)
    bias = jax.random.uniform(kb, (CO,), jnp.float32, -bound, bound)

    out = jax.block_until_ready(jax.jit(model_forward)(x, weight, bias))

    # reference: explicit nearest-2x upsample + XLA conv (PyTorch semantics) + leaky_relu
    xu = jnp.repeat(jnp.repeat(x, 2, axis=2), 2, axis=3)
    ref = lax.conv_general_dilated(
        xu, weight, window_strides=(STRIDE, STRIDE),
        padding=((PAD, PAD), (PAD, PAD)),
        dimension_numbers=("NCHW", "OIHW", "NCHW"),
        precision=lax.Precision.HIGHEST,
    ) + bias.reshape(1, CO, 1, 1)
    ref = jnp.where(ref > 0, ref, NEG_SLOPE * ref)

    assert out.shape == ref.shape, (out.shape, ref.shape)
    assert jnp.allclose(out, ref, atol=1e-4, rtol=1e-4), float(jnp.max(jnp.abs(out - ref)))
    print("KERNEL_OK")
</pallas_src>

<mosaic_0001>
module attributes {stable_mosaic.version = 11 : i64} {
  func.func @kernel(%arg0: i32, %arg1: i32, %arg2: i32, %arg3: memref<48xi32, #tpu.memory_space<smem>>, %arg4: memref<1x56x256xf32, #tpu.memory_space<vmem>>, %arg5: memref<1x256xf32, #tpu.memory_space<vmem>>, %arg6: memref<1x16x256xf32, #tpu.memory_space<vmem>>) attributes {dimension_semantics = [#tpu.dimension_semantics<parallel>, #tpu.dimension_semantics<parallel>, #tpu.dimension_semantics<parallel>], iteration_bounds = array<i64: 2, 1, 1>, scalar_prefetch = 1 : i64, scratch_operands = 0 : i64, tpu.core_type = #tpu.core_type<tc>, window_params = [{transform_indices = @transform_0, window_bounds = array<i64: 1, 56, 256>}, {transform_indices = @transform_1, window_bounds = array<i64: 1, 256>}, {transform_indices = @transform_2, window_bounds = array<i64: 1, 16, 256>}]} {
    %c16_i32 = arith.constant 16 : i32
    %0 = arith.muli %arg1, %c16_i32 : i32
    %c0 = arith.constant 0 : index
    %c0_0 = arith.constant 0 : index
    %1 = vector.load %arg5[%c0, %c0_0] : memref<1x256xf32, #tpu.memory_space<vmem>>, vector<1x256xf32>
    %c0_i32 = arith.constant 0 : i32
    %c16_i32_1 = arith.constant 16 : i32
    %2 = arith.addi %c0_i32, %c16_i32_1 : i32
    %c1_i32 = arith.constant 1 : i32
    scf.for %arg7 = %c0_i32 to %2 step %c1_i32  : i32 {
      %3 = arith.addi %0, %arg7 : i32
      %4 = arith.index_cast %3 : i32 to index
      %5 = memref.load %arg3[%4] : memref<48xi32, #tpu.memory_space<smem>>
      %c16_i32_3 = arith.constant 16 : i32
      %6 = arith.addi %c16_i32_3, %3 : i32
      %7 = arith.index_cast %6 : i32 to index
      %8 = memref.load %arg3[%7] : memref<48xi32, #tpu.memory_space<smem>>
      %c32_i32 = arith.constant 32 : i32
      %9 = arith.addi %c32_i32, %3 : i32
      %10 = arith.index_cast %9 : i32 to index
      %11 = memref.load %arg3[%10] : memref<48xi32, #tpu.memory_space<smem>>
      %c0_4 = arith.constant 0 : index
      %12 = arith.index_cast %5 : i32 to index
      %c0_5 = arith.constant 0 : index
      %13 = vector.load %arg4[%c0_4, %12, %c0_5] : memref<1x56x256xf32, #tpu.memory_space<vmem>>, vector<1x1x256xf32>
      %14 = vector.shape_cast %13 : vector<1x1x256xf32> to vector<1x256xf32>
      %c0_6 = arith.constant 0 : index
      %15 = arith.index_cast %8 : i32 to index
      %c0_7 = arith.constant 0 : index
      %16 = vector.load %arg4[%c0_6, %15, %c0_7] : memref<1x56x256xf32, #tpu.memory_space<vmem>>, vector<1x1x256xf32>
      %17 = vector.shape_cast %16 : vector<1x1x256xf32> to vector<1x256xf32>
      %18 = arith.addf %14, %17 : vector<1x256xf32>
      %c0_8 = arith.constant 0 : index
      %19 = arith.index_cast %11 : i32 to index
      %c0_9 = arith.constant 0 : index
      %20 = vector.load %arg4[%c0_8, %19, %c0_9] : memref<1x56x256xf32, #tpu.memory_space<vmem>>, vector<1x1x256xf32>
      %21 = vector.shape_cast %20 : vector<1x1x256xf32> to vector<1x256xf32>
      %22 = arith.addf %18, %21 : vector<1x256xf32>
      %23 = arith.addf %22, %1 : vector<1x256xf32>
      %cst = arith.constant 0.000000e+00 : f32
      %24 = vector.broadcast %cst : f32 to vector<1x256xf32>
      %25 = arith.cmpf ogt, %23, %24 : vector<1x256xf32>
      %cst_10 = arith.constant 0.00999999977 : f32
      %26 = vector.broadcast %cst_10 : f32 to vector<1x256xf32>
      %27 = arith.mulf %26, %23 : vector<1x256xf32>
      %28 = arith.select %25, %23, %27 : vector<1x256xi1>, vector<1x256xf32>
      %c0_11 = arith.constant 0 : index
      %29 = arith.index_cast %arg7 : i32 to index
      %c0_12 = arith.constant 0 : index
      %30 = vector.load %arg6[%c0_11, %29, %c0_12] : memref<1x16x256xf32, #tpu.memory_space<vmem>>, vector<1x1x256xf32>
      %31 = vector.shape_cast %30 : vector<1x1x256xf32> to vector<1x256xf32>
      %32 = vector.shape_cast %28 : vector<1x256xf32> to vector<1x1x256xf32>
      tpu.vector_store %arg6[%c0_11, %29, %c0_12], %32 {strides = array<i32>} : memref<1x16x256xf32, #tpu.memory_space<vmem>>, vector<1x1x256xf32>,
    }
    %c16_i32_2 = arith.constant 16 : i32
    return
  }
  func.func @transform_0(%arg0: i32, %arg1: i32, %arg2: i32, %arg3: memref<48xi32, #tpu.memory_space<smem>>) -> (i32, i32, i32) {
    %c0_i32 = arith.constant 0 : i32
    %c0_i32_0 = arith.constant 0 : i32
    return %arg0, %c0_i32, %arg2 : i32, i32, i32
  }
  func.func @transform_1(%arg0: i32, %arg1: i32, %arg2: i32, %arg3: memref<48xi32, #tpu.memory_space<smem>>) -> (i32, i32) {
    %c0_i32 = arith.constant 0 : i32
    %c0_i32_0 = arith.constant 0 : i32
    return %c0_i32, %arg2 : i32, i32
  }
  func.func @transform_2(%arg0: i32, %arg1: i32, %arg2: i32, %arg3: memref<48xi32, #tpu.memory_space<smem>>) -> (i32, i32, i32) {
    %c0_i32 = arith.constant 0 : i32
    return %arg0, %arg1, %arg2 : i32, i32, i32
  }
}

</mosaic_0001>

<bundles_post_ra>
// kernel: model_forward.1
= control target key start
LH: loop header
LB: loop body
LE: loop exit
PB: predicated region body
PF: predicated region fallthrough
CT: control target
= control target key end

     0   :  { %s613_s0 = inlined_call_operand.vmem [shape: s32[48], index: 0, kind: input, shape index: {}]   ;;  %s614_s1 = inlined_call_operand.vmem [shape: f32[2,56,256], index: 1, kind: input, shape index: {}]   ;;  %s615_s2 = inlined_call_operand.vmem [shape: f32[1,256], index: 2, kind: input, shape index: {}]   ;;  %s616_s3 = inlined_call_operand.vmem [shape: f32[2,16,256], index: 3, kind: output, shape index: {}]  }
   0x1   :  { %s8_s14 = sshll.u32 %s613_s0, 4  ;;  %s9_s14 = int_to_ptr.vmem [resolvable:$true] %s8_s14 }
   0x2   :  { %s486_s15 = scalar_lea.vmem %s9_s14, 16  ;;  %p491_p1 = scmp.lt.s32.totalorder %s9_s14, %s9_s14 }
   0x3   :  { %p487_p0 = scmp.ne.s32.totalorder %s9_s14, %s486_s15  ;;  %p492_p2 = scmp.lt.s32.totalorder %s486_s15, %s486_s15 }
   0x5   :  { %p493_p3 = por %p492_p2, %p491_p1 }
   0x7   :  { %p494_p4 = pnand %p493_p3, %p487_p0 }
   0x9   :  { %497 = shalt.err (!%p494_p4)  }
   0xa   :  { %s532_s16 = smov [#allocation3]  }
   0xb   :  { %11 = dma.vmem_to_smem %s9_s14, 16, %s532_s16, [#allocation2] }
   0xc   :  { %514 = dma.done.wait [#allocation2], 16 }
   0xd   :  { %515 = vsyncadd [#allocation2], 4294967280 }
   0xe   :  { %13 = sfence }
   0xf   :  { %s556_s17 = smov 0   ;;  %s558_s18 = smov 0  }
  0x10   :  { %s560_s19 = smov 0  }
  0x11 LB: > { %s38_s0 = sadd.s32 1, %s522_s18  ;;  %p433_p5 = scmp.ge.s32.totalorder %s526_s19, 1  ;;  %s526_s19 = sphi %s560_s19, %s19_s19   ;;  %s522_s18 = sphi %s558_s18, %s618_s18   ;;  %s518_s17 = sphi %s556_s17, %s617_s17  }
  0x12   : > { %p40_p6 = scmp.ge.s32.totalorder %s38_s0, 2  ;;  %p159_p7 = scmp.lt.s32.totalorder %s526_s19, 3 }
  0x14   : > { %s620_s0 = smov (%p40_p6, %s38_s0), 0  ;;  %p160_p8 = pnand %p433_p5, %p159_p7 }
  0x15   : > { %p199_p9 = scmp.lt.s32.totalorder (!%p160_p8), %s518_s17, 1  ;;  %s587_s30 = smov (!%p160_p8), 0  }
  0x16   : > { %163 = sbr.rel (%p160_p8) target bundleno = 55 (0x37), region = 28 }
  0x1b   : > { %v230_v0 = vld [vmem:[%s615_s2] sm:$0x3]  ;;  %s622_s17 = smov (!%p199_p9, %s518_s17), 1 }
  0x1c   : > { %s452_s22 = smul.u32 112, %s622_s17  ;;  %s447_s23 = sshll.u32 %s622_s17, 5 }
  0x1d   : > { %s580_s26 = scalar_lea.vmem %s616_s3, %s447_s23 }
  0x1e   : > { %s585_s29 = scalar_lea.vmem %s614_s1, %s452_s22 }
  0x1f LB: >> { %s238_s4 = sld [smem:[#allocation3 + %s530_s30]]  ;;  %s239_s5 = sadd.s32 16, %s530_s30  ;;  %v276_v6 = vlaneseq  ;;  %s530_s30 = sphi %s587_s30, %s236_s30  }
  0x20   : >> { %s240_s6 = sld [smem:[#allocation3 + %s239_s5]]  ;;  %s241_s7 = sadd.s32 32, %s530_s30 }
  0x21   : >> { %s242_s8 = sld [smem:[#allocation3 + %s241_s7]]  ;;  %s280_s9 = sshra.s32 %s530_s30, 3  ;;  %vm278_vm1 = vcmp.lt.s32.totalorder %v276_v6, 256 }
  0x22   : >> { %s283_s27 = sand.u32 7, %s530_s30  ;;  %s236_s30 = sadd.s32 1, %s530_s30  }
  0x23   : >> { %p233_p10 = scmp.ge.s32.totalorder %s236_s30, 16  }
  0x25   : >> { %s243_s10 = sshra.s32 %s238_s4, 3  ;;  %s246_s11 = sand.u32 7, %s238_s4 }
  0x26   : >> { %s448_s12 = sshll.u32 %s243_s10, 4  ;;  %s252_s13 = sshra.s32 %s240_s6, 3 }
  0x27   : >> { %s249_s14 = sadd.s32 %s448_s12, %s246_s11  ;;  %s255_s15 = sand.u32 7, %s240_s6 }
  0x28   : >> { %s250_s16 = scalar_lea.vmem %s585_s29, %s249_s14  ;;  %s449_s17 = sshll.u32 %s252_s13, 4 }
  0x29   : >> { %v251_v1 = vld [vmem:[%s250_s16] ss:$8 sm:$0x3]  ;;  %s258_s20 = sadd.s32 %s449_s17, %s255_s15  ;;  %s262_s21 = sshra.s32 %s242_s8, 3 }
  0x2a   : >> { %s259_s22 = scalar_lea.vmem %s585_s29, %s258_s20  ;;  %s265_s23 = sand.u32 7, %s242_s8 }
  0x2b   : >> { %v260_v2 = vld [vmem:[%s259_s22] ss:$8 sm:$0x3]  ;;  %s450_s24 = sshll.u32 %s262_s21, 4  ;;  %s451_s4 = sshll.u32 %s280_s9, 4 }
  0x2c   : >> { %v261_v3 = vadd.f32 %v260_v2, %v251_v1  ;;  %s268_s25 = sadd.s32 %s450_s24, %s265_s23  ;;  %s286_s5 = sadd.s32 %s451_s4, %s283_s27 }
  0x2d   : >> { %s269_s28 = scalar_lea.vmem %s585_s29, %s268_s25  ;;  %s287_s6 = scalar_lea.vmem %s580_s26, %s286_s5 }
  0x2e   : >> { %v270_v4 = vld [vmem:[%s269_s28] ss:$8 sm:$0x3] }
  0x2f   : >> { %v271_v5 = vadd.f32 %v270_v4, %v261_v3 }
  0x31   : >> { %v272_v7 = vadd.f32 %v271_v5, %v230_v0 }
  0x32   : > { %235 = sbr.rel (!%p233_p10) target bundleno = 31 (0x1f), region = 72 }
  0x33   : >> { %vm273_vm0 = vcmp.gt.f32.partialorder %v272_v7, 0.0  ;;  %v274_v8 = vmul.f32 0.01, %v272_v7 }
  0x35   : >> { %v275_v9 = vsel %vm273_vm0, %v272_v7, %v274_v8 }
  0x36   : >> { %288 = vst.msk [vmem:[%s287_s6] ss:$8 sm:$0x3] %vm278_vm1, %v275_v9 }
  0x37 PF: > { %s19_s19 = sadd.s32 1, %s526_s19   ;;  %s617_s17 = smov %s522_s18 }
  0x38   : > { %p16_p11 = scmp.ge.s32.totalorder %s19_s19, 4   ;;  %s618_s18 = smov %s620_s0 }
  0x3a   :  { %18 = sbr.rel (!%p16_p11) target bundleno = 17 (0x11), region = 83 }

</bundles_post_ra>
